<compile_context>
chip_gen: v6e
topology: v6e:2x2x1
jax: 0.10.0
libtpu: 0.0.40
codegen_flags: <defaults>
</compile_context>

<pallas_src>
import functools

import jax
import jax.numpy as jnp
from jax import lax
from jax.experimental import pallas as pl
from jax.experimental.pallas import tpu as pltpu


def _aggregator_kernel(self_ref, neigh_ref, w_ref, out_ref, att_ref, *, K):
    tb, D = self_ref.shape
    KP = att_ref.shape[-1]

    # Projection on the MXU with f32 accumulation.  Operands stay f32: this
    # matmul is tiny next to the HBM-bound neighbor stream, and exactness vs.
    # the reference matters more than bf16 MXU throughput here.
    proj = jnp.dot(self_ref[...], w_ref[...],
                   preferred_element_type=jnp.float32)                 # (tb, D)

    # Neighbors arrive as one densely-packed 2-D tile (tb*K, D); relabel to
    # (tb, K, D).  For f32 with K a multiple of 8 this is a pure sublane-group
    # split (no data movement).
    n = neigh_ref[...].reshape(tb, K, D).astype(jnp.float32)

    if K >= 32:
        # Large-K path: contraction over D on the MXU (batched dot_general).
        scores = lax.dot_general(proj, n, (((1,), (2,)), ((0,), (0,))),
                                 preferred_element_type=jnp.float32)   # (tb, K)
    else:
        # Small-K path: VPU broadcast-multiply + lane reduce.
        scores = jnp.sum(proj[:, None, :] * n, axis=-1)                # (tb, K)

    # Lane-dense softmax: pad the logits once to the 128-lane slab width with a
    # large negative constant; padded lanes get exactly-zero attention and the
    # attention store below is a full, unmasked vst.
    if KP > K:
        scores = jnp.concatenate(
            [scores, jnp.full((tb, KP - K), -1e30, jnp.float32)], axis=-1)

    m = jnp.max(scores, axis=-1, keepdims=True)
    e = jnp.exp(scores - m)
    denom = jnp.sum(e, axis=-1, keepdims=True)
    # Exact division (the approximate EUP reciprocal was dropped so attention
    # rows sum to 1 within f32 rounding).
    att_p = e / denom                                                  # (tb, KP)

    att_ref[...] = att_p.astype(att_ref.dtype)

    att = att_p[:, :K]                                                 # (tb, K)
    if K >= 32:
        agg = lax.dot_general(att, n, (((1,), (1,)), ((0,), (0,))),
                              preferred_element_type=jnp.float32)      # (tb, D)
    else:
        agg = jnp.sum(att[:, :, None] * n, axis=-2)                    # (tb, D)

    # AGG('neighbor'): the module returns the aggregated neighbor vector.
    out_ref[...] = agg.astype(out_ref.dtype)


def aggregator_forward(self_vector, neighbor_vectors, w, *, tb=None):
    B, D = self_vector.shape
    Bn, K, Dn = neighbor_vectors.shape
    assert (Bn, Dn) == (B, D) and w.shape == (D, D)

    # Pad the batch to a multiple of 8 (f32 sublane count) so every batch tile is
    # a legal full-granularity block even for awkward B.
    B_pad = 8 * pl.cdiv(B, 8)

    # Batch tile: full tiles only, capped at 128 rows (fills the v5e 4x128 MXU and
    # keeps per-tile VMEM modest everywhere); prefer >= 2 grid steps when the
    # batch allows so ("parallel",) can shard across v7x's two TensorCores.
    if tb is None:
        units = B_pad // 8
        best = 1
        for u in range(1, units + 1):
            if units % u == 0 and 8 * u <= 128 and (units // u >= 2 or units < 2):
                best = u
        tb = 8 * best
    assert tb % 8 == 0 and B_pad % tb == 0
    grid = (B_pad // tb,)

    KP = 128 * pl.cdiv(K, 128)          # lane-dense attention-output width

    # No wrapper-side dtype cast (would add an extra read+write of the dominant
    # neighbor tensor).  Flatten neighbors to 2-D so the sublane axis is densely
    # packed and each grid step is one large contiguous DMA.
    s_in = self_vector
    n_in = neighbor_vectors.reshape(B * K, D)
    if B_pad != B:
        s_in = jnp.pad(s_in, ((0, B_pad - B), (0, 0)))
        n_in = jnp.pad(n_in, ((0, (B_pad - B) * K), (0, 0)))

    isz = jnp.dtype(s_in.dtype).itemsize
    # Double-buffered pipeline tiles + resident W + double-buffered outputs +
    # in-kernel f32 temporaries (broadcast products / exp slab).
    vmem_needed = (2 * (tb * D * isz + tb * K * D * isz)
                   + 2 * D * D * isz
                   + 2 * (tb * D * 4 + tb * KP * 4)
                   + 3 * tb * K * D * 4 + 4 * tb * KP * 4)
    try:
        cap = int(getattr(pltpu.get_tpu_info(), "vmem_capacity_bytes", 0))
    except Exception:
        cap = 0
    if cap <= 0:
        cap = 64 << 20                  # v7x per-TC VMEM (smallest current gen)
    vmem_limit = int(min(max(vmem_needed + (4 << 20), 16 << 20), (cap * 4) // 5))

    cost = pl.CostEstimate(
        flops=2 * B_pad * D * D + 4 * B_pad * K * D,
        transcendentals=B_pad * KP,
        bytes_accessed=(B_pad * D + B_pad * K * D + D * D) * isz
                       + B_pad * D * isz + B_pad * KP * 4,
    )

    out_shapes = (
        jax.ShapeDtypeStruct((B_pad, D), self_vector.dtype),   # aggregated vec
        jax.ShapeDtypeStruct((B_pad, KP), jnp.float32),        # padded attention
    )

    kernel = functools.partial(_aggregator_kernel, K=K)
    out, att_p = pl.pallas_call(
        kernel,
        out_shape=out_shapes,
        grid_spec=pltpu.PrefetchScalarGridSpec(
            num_scalar_prefetch=0,
            grid=grid,
            in_specs=[
                pl.BlockSpec((tb, D), lambda i: (i, 0)),
                pl.BlockSpec((tb * K, D), lambda i: (i, 0)),
                # Constant block index -> W stays resident across grid steps.
                pl.BlockSpec((D, D), lambda i: (0, 0)),
            ],
            out_specs=[
                pl.BlockSpec((tb, D), lambda i: (i, 0)),
                pl.BlockSpec((tb, KP), lambda i: (i, 0)),
            ],
        ),
        compiler_params=pltpu.CompilerParams(
            dimension_semantics=("parallel",),
            vmem_limit_bytes=vmem_limit,
        ),
        cost_estimate=cost,
    )(s_in, n_in, w)

    return out[:B], att_p[:B, :K]


def aggregator_reference(self_vector, neighbor_vectors, w):
    s = self_vector.astype(jnp.float32)
    n = neighbor_vectors.astype(jnp.float32)
    ww = w.astype(jnp.float32)
    proj = s @ ww
    scores = jnp.einsum("bd,bkd->bk", proj, n)
    att = jax.nn.softmax(scores, axis=-1)
    agg = jnp.einsum("bk,bkd->bd", att, n)
    return agg.astype(self_vector.dtype), att


if __name__ == "__main__":
    B, K, D = 16, 8, 128  # batch, neighbors per node, feature dim

    key = jax.random.PRNGKey(0)
    k1, k2, k3 = jax.random.split(key, 3)
    self_vec = jax.random.normal(k1, (B, D), dtype=jnp.float32)
    neigh = jax.random.normal(k2, (B, K, D), dtype=jnp.float32)
    # Deterministic attention weight parameter (shape [D, D]).
    w = jax.random.normal(k3, (D, D), dtype=jnp.float32) * (1.0 / jnp.sqrt(D))

    out, att = aggregator_forward(self_vec, neigh, w)
    out = jax.block_until_ready(out)
    att = jax.block_until_ready(att)

    ref_out, ref_att = aggregator_reference(self_vec, neigh, w)
    assert out.shape == (B, D) and att.shape == (B, K)
    assert jnp.allclose(out, ref_out, atol=2e-3, rtol=2e-3), "output mismatch"
    assert jnp.allclose(att, ref_att, atol=2e-3, rtol=2e-3), "attention mismatch"

    print("KERNEL_OK")
</pallas_src>

<mosaic_0001>
module attributes {stable_mosaic.version = 11 : i64} {
  func.func @_aggregator_kernel(%arg0: i32, %arg1: memref<8x128xf32, #tpu.memory_space<vmem>>, %arg2: memref<64x128xf32, #tpu.memory_space<vmem>>, %arg3: memref<128x128xf32, #tpu.memory_space<vmem>>, %arg4: memref<8x128xf32, #tpu.memory_space<vmem>>, %arg5: memref<8x128xf32, #tpu.memory_space<vmem>>) attributes {dimension_semantics = [#tpu.dimension_semantics<parallel>], iteration_bounds = array<i64: 2>, scalar_prefetch = 0 : i64, scratch_operands = 0 : i64, tpu.core_type = #tpu.core_type<tc>, window_params = [{transform_indices = @transform_0, window_bounds = array<i64: 8, 128>}, {transform_indices = @transform_1, window_bounds = array<i64: 64, 128>}, {pipeline_mode = #tpu.pipeline_mode<synchronous>, transform_indices = @transform_2, window_bounds = array<i64: 128, 128>}, {transform_indices = @transform_3, window_bounds = array<i64: 8, 128>}, {transform_indices = @transform_4, window_bounds = array<i64: 8, 128>}]} {
    %c0 = arith.constant 0 : index
    %c0_0 = arith.constant 0 : index
    %0 = vector.load %arg1[%c0, %c0_0] : memref<8x128xf32, #tpu.memory_space<vmem>>, vector<8x128xf32>
    %c0_1 = arith.constant 0 : index
    %c0_2 = arith.constant 0 : index
    %1 = vector.load %arg3[%c0_1, %c0_2] : memref<128x128xf32, #tpu.memory_space<vmem>>, vector<128x128xf32>
    %cst = arith.constant dense<0.000000e+00> : vector<8x128xf32>
    %2 = tpu.matmul %0, %1, %cst {dimension_numbers = #tpu.dot_dimension_numbers<[1], [0], [0], [1], [0, 0, 1, 1], [], []>} : vector<8x128xf32>, vector<128x128xf32>, vector<8x128xf32> -> vector<8x128xf32>
    %c0_3 = arith.constant 0 : index
    %c0_4 = arith.constant 0 : index
    %3 = vector.load %arg2[%c0_3, %c0_4] : memref<64x128xf32, #tpu.memory_space<vmem>>, vector<64x128xf32>
    %4 = vector.shape_cast %3 : vector<64x128xf32> to vector<8x8x128xf32>
    %5 = vector.shape_cast %2 : vector<8x128xf32> to vector<8x1x128xf32>
    %6 = vector.broadcast %5 : vector<8x1x128xf32> to vector<8x8x128xf32>
    %7 = arith.mulf %6, %4 : vector<8x8x128xf32>
    %cst_5 = arith.constant dense<0.000000e+00> : vector<8x8xf32>
    %8 = vector.multi_reduction <add>, %7, %cst_5 [2] : vector<8x8x128xf32> to vector<8x8xf32>
    %cst_6 = arith.constant -1.000000e+30 : f32
    %9 = vector.broadcast %cst_6 : f32 to vector<8x120xf32>
    %10 = tpu.concatenate %8, %9 in 1 : vector<8x8xf32>, vector<8x120xf32> -> vector<8x128xf32>
    %cst_7 = arith.constant dense<0xFF800000> : vector<8xf32>
    %11 = vector.multi_reduction <maximumf>, %10, %cst_7 [1] : vector<8x128xf32> to vector<8xf32>
    %12 = vector.shape_cast %11 : vector<8xf32> to vector<8x1xf32>
    %13 = vector.broadcast %12 : vector<8x1xf32> to vector<8x128xf32>
    %14 = arith.subf %10, %13 : vector<8x128xf32>
    %15 = math.exp %14 : vector<8x128xf32>
    %cst_8 = arith.constant dense<0.000000e+00> : vector<8xf32>
    %16 = vector.multi_reduction <add>, %15, %cst_8 [1] : vector<8x128xf32> to vector<8xf32>
    %17 = vector.shape_cast %16 : vector<8xf32> to vector<8x1xf32>
    %18 = vector.broadcast %17 : vector<8x1xf32> to vector<8x128xf32>
    %19 = arith.divf %15, %18 : vector<8x128xf32>
    %c0_9 = arith.constant 0 : index
    %c0_10 = arith.constant 0 : index
    %20 = vector.load %arg5[%c0_9, %c0_10] : memref<8x128xf32, #tpu.memory_space<vmem>>, vector<8x128xf32>
    tpu.vector_store %arg5[%c0_9, %c0_10], %19 {strides = array<i32>} : memref<8x128xf32, #tpu.memory_space<vmem>>, vector<8x128xf32>,
    %21 = vector.extract_strided_slice %19 {offsets = [0, 0], sizes = [8, 8], strides = [1, 1]} : vector<8x128xf32> to vector<8x8xf32>
    %22 = vector.shape_cast %21 : vector<8x8xf32> to vector<8x8x1xf32>
    %23 = vector.broadcast %22 : vector<8x8x1xf32> to vector<8x8x128xf32>
    %24 = arith.mulf %23, %4 : vector<8x8x128xf32>
    %cst_11 = arith.constant dense<0.000000e+00> : vector<8x128xf32>
    %25 = vector.multi_reduction <add>, %24, %cst_11 [1] : vector<8x8x128xf32> to vector<8x128xf32>
    %c0_12 = arith.constant 0 : index
    %c0_13 = arith.constant 0 : index
    %26 = vector.load %arg4[%c0_12, %c0_13] : memref<8x128xf32, #tpu.memory_space<vmem>>, vector<8x128xf32>
    tpu.vector_store %arg4[%c0_12, %c0_13], %25 {strides = array<i32>} : memref<8x128xf32, #tpu.memory_space<vmem>>, vector<8x128xf32>,
    return
  }
  func.func @transform_0(%arg0: i32) -> (i32, i32) {
    %c0_i32 = arith.constant 0 : i32
    %c0_i32_0 = arith.constant 0 : i32
    return %arg0, %c0_i32 : i32, i32
  }
  func.func @transform_1(%arg0: i32) -> (i32, i32) {
    %c0_i32 = arith.constant 0 : i32
    %c0_i32_0 = arith.constant 0 : i32
    return %arg0, %c0_i32 : i32, i32
  }
  func.func @transform_2(%arg0: i32) -> (i32, i32) {
    %c0_i32 = arith.constant 0 : i32
    %c0_i32_0 = arith.constant 0 : i32
    %c0_i32_1 = arith.constant 0 : i32
    return %c0_i32, %c0_i32_0 : i32, i32
  }
  func.func @transform_3(%arg0: i32) -> (i32, i32) {
    %c0_i32 = arith.constant 0 : i32
    %c0_i32_0 = arith.constant 0 : i32
    return %arg0, %c0_i32 : i32, i32
  }
  func.func @transform_4(%arg0: i32) -> (i32, i32) {
    %c0_i32 = arith.constant 0 : i32
    %c0_i32_0 = arith.constant 0 : i32
    return %arg0, %c0_i32 : i32, i32
  }
}

</mosaic_0001>

<bundles_post_ra>
// kernel: tpu_custom_call.1
= control target key start
LH: loop header
LB: loop body
LE: loop exit
PB: predicated region body
PF: predicated region fallthrough
CT: control target
= control target key end

     0   :  { %10 = vsyncpa [#allocation3], 0  ;;  %s1543_s0 = inlined_call_operand.hbm [shape: f32[16,128], index: 0, kind: input, shape index: {}]   ;;  %s1544_s1 = inlined_call_operand.hbm [shape: f32[128,128], index: 1, kind: input, shape index: {}]   ;;  %s1545_s2 = inlined_call_operand.hbm [shape: f32[128,128], index: 2, kind: input, shape index: {}]   ;;  %s1546_s3 = inlined_call_operand.hbm [shape: f32[16,128], index: 3, kind: output, shape index: {0}]   ;;  %s1547_s4 = inlined_call_operand.hbm [shape: f32[16,128], index: 4, kind: output, shape index: {1}]  }
   0x1   :  { %12 = vsyncpa [#allocation3 + $0x1], 0 }
   0x2   :  { %13 = vsyncpa [#allocation6], 0 }
   0x3   :  { %15 = vsyncpa [#allocation6 + $0x1], 0 }
   0x4   :  { %16 = vsyncpa [#allocation4], 0 }
   0x5   :  { %18 = vsyncpa [#allocation4 + $0x1], 0 }
   0x6   :  { %19 = vsyncpa [#allocation10], 0 }
   0x7   :  { %21 = vsyncpa [#allocation10 + $0x1], 0  ;;  %s1223_s15 = smov 0   ;;  %s1225_s16 = smov 0  }
   0x8   :  { %s1227_s17 = smov 0   ;;  %s1229_s18 = smov 0  }
   0x9 LB: > { %s1244_s19 = sadd.s32 4294967295, %s1186_s18   ;;  %s852_s20 = sadd.s32 4294967294, %s1186_s18   ;;  %s1186_s18 = sphi %s1229_s18, %s1571_s18   ;;  %s1182_s17 = sphi %s1227_s17, %s1570_s17   ;;  %s1178_s16 = sphi %s1225_s16, %s1569_s16   ;;  %s1174_s15 = sphi %s1223_s15, %s1568_s15  }
   0xa   : > { %p47_p0 = scmp.ne.s32.totalorder %s1178_s16, %s1174_s15  ;;  %p1548_p1 = scmp.eq.s32.totalorder %s1244_s19, 0 }
   0xb   : > { %p124_p3 = scmp.eq.s32.totalorder %s852_s20, 1  ;;  %p853_p5 = scmp.ge.s32.totalorder %s1186_s18, 1 }
   0xc   : > { %p1253_p4 = por %p1548_p1, %p47_p0  ;;  %p157_p7 = scmp.lt.s32.totalorder %s1186_s18, 3 }
   0xd   : > { %p1258_p6 = por %p124_p3, %p47_p0  ;;  %s1188_s24 = smov [#allocation7]  }
   0xe   : > { %s1553_s21 = scalar_select %p1253_p4, 1, 0 }
   0xf   : > { %s1554_s22 = scalar_select %p1258_p6, 1, 0 }
  0x10   : > { %p1263_p8 = pnand %p853_p5, %p157_p7  ;;  %s169_s25 = sshll.u32 %s1188_s24, 4  ;;  %s170_s25 = int_to_ptr.vmem [resolvable:$true] %s169_s25 }
  0x11   : > { %s1277_s27 = sadd.s32 1, %s1186_s18   ;;  %s34_s28 = sadd.s32 1, %s1182_s17 }
  0x12   : > { %s1555_s23 = scalar_select %p1263_p8, 1, 0 }
  0x13   : > { %p938_p9 = pneg %p1263_p8  ;;  %s31_s29 = ssub.s32 %s1186_s18, %s1277_s27 }
  0x14   : > { %s1013_s30 = scalar_lea.vmem %s170_s25, 2048  ;;  %p1021_p5 = scmp.lt.s32.totalorder %s170_s25, %s170_s25 }
  0x15   : > { %p1272_p11 = pnand %p938_p9, %p1548_p1  ;;  %p1014_p13 = scmp.ne.s32.totalorder %s170_s25, %s1013_s30 }
  0x16   : > { %p1022_p7 = scmp.lt.s32.totalorder %s1013_s30, %s1013_s30 }
  0x17   : > { %p1004_p12 = pneg %p1272_p11 }
  0x18   : > { %p1023_p10 = por %p1022_p7, %p1021_p5 }
  0x19   : > { %p1016_p0 = pnand %p1014_p13, %p1004_p12 }
  0x1b   : > { %p1017_p3 = pneg %p1016_p0 }
  0x1d   : > { %p1024_p2 = pnand %p1023_p10, %p1017_p3 }
  0x1f   : > { %1027 = shalt.err (!%p1024_p2)
}
  0x20   : > { %s1549_s5 = smov 128   ;;  %s1190_s6 = smov 8  }
  0x21   : > { %941 = dma.hbm_to_vmem [thread:$0]  (!%p1272_p11), %s1545_s2, 2048, %s170_s25, [#allocation6], %s1549_s5, %s1549_s5, %s1190_s6  }
  0x22   : > { %p32_p2 = scmp.eq.s32.totalorder %s31_s29, 0  ;;  %p41_p9 = scmp.ne.s32.totalorder %s1182_s17, %s1178_s16 }
  0x23   : > { %p42_p10 = scmp.eq.s32.totalorder %s1186_s18, 0  ;;  %p957_p12 = scmp.lt.s32.totalorder %s1186_s18, 2 }
  0x24   : > { %s1297_s9 = scalar_select %p32_p2, %s1182_s17, %s34_s28  }
  0x25   : > { %p43_p13 = por %p42_p10, %p41_p9  ;;  %p1557_p0 = scmp.eq.s32.totalorder %s1244_s19, 1 }
  0x26   : > { %s1306_s11 = sand.u32 1, %s1182_s17   ;;  %s857_s12 = sshll.u32 %s1186_s18, 7 }
  0x27   : > { %p1301_p3 = por %p1557_p0, %p41_p9  ;;  %s856_s13 = sshll.u32 %s1306_s11, 3 }
  0x28   : > { %s1313_s24 = scalar_lea.hbm %s1543_s0, %s857_s12  ;;  %s187_s25 = scalar_lea.vmem [#allocation2], %s856_s13 }
  0x29   : > { %s1558_s10 = scalar_select %p1301_p3, 1, 0 }
  0x2a   : > { %s194_s26 = sshll.u32 %s187_s25, 4  ;;  %p1315_p11 = pnand %p957_p12, %p43_p13  ;;  %s195_s26 = int_to_ptr.vmem [resolvable:$true] %s194_s26 }
  0x2b   : > { %s858_s29 = sshll.u32 %s1306_s11, 6  ;;  %s184_s30 = scalar_lea.sflag [#allocation3], %s1306_s11 }
  0x2c   : > { %s1028_s7 = scalar_lea.hbm %s1313_s24, 128  ;;  %p1030_p7 = pneg %p1315_p11 }
  0x2d   : > { %p1029_p5 = scmp.ne.s32.totalorder %s1313_s24, %s1028_s7  ;;  %s1033_s13 = scalar_lea.hbm %s1543_s0, 256 }
  0x2e   : > { %p1034_p10 = scmp.lt.s32.totalorder %s1313_s24, %s1543_s0  ;;  %p1035_p12 = scmp.lt.s32.totalorder %s1033_s13, %s1028_s7 }
  0x2f   : > { %p1031_p2 = pnand %p1030_p7, %p1029_p5 }
  0x30   : > { %p1036_p13 = por %p1035_p12, %p1034_p10 }
  0x31   : > { %p1032_p9 = pneg %p1031_p2 }
  0x33   : > { %p1037_p0 = pnand %p1036_p13, %p1032_p9 }
  0x35   : > { %1040 = shalt.err (!%p1037_p0)
}
  0x36   : > { %s1041_s11 = scalar_lea.vmem %s195_s26, 128  ;;  %s1191_s25 = smov [#allocation2]  }
  0x37   : > { %p1042_p1 = scmp.ne.s32.totalorder %s195_s26, %s1041_s11  ;;  %s1046_s5 = sshll.u32 %s1191_s25, 4  ;;  %s1047_s5 = int_to_ptr.vmem [resolvable:$false] %s1046_s5 }
  0x38   : > { %s1048_s8 = scalar_lea.vmem %s1047_s5, 256  ;;  %p1049_p2 = scmp.lt.s32.totalorder %s195_s26, %s1047_s5 }
  0x39   : > { %p1044_p6 = pnand %p1042_p1, %p1030_p7  ;;  %p1050_p3 = scmp.lt.s32.totalorder %s1048_s8, %s1041_s11 }
  0x3b   : > { %p1045_p5 = pneg %p1044_p6  ;;  %p1051_p4 = por %p1050_p3, %p1049_p2 }
  0x3d   : > { %p1052_p8 = pnand %p1051_p4, %p1045_p5 }
  0x3f   : > { %1055 = shalt.err (!%p1052_p8)
}
  0x40   : > { %945 = dma.hbm_to_vmem [thread:$0]  (!%p1315_p11), %s1313_s24, 128, %s195_s26, %s184_s30  }
  0x41   : > { %s205_s7 = scalar_lea.vmem [#allocation5], %s858_s29  ;;  %s201_s13 = sand.u32 1, %s1186_s18  }
  0x42   : > { %s212_s12 = sshll.u32 %s205_s7, 4  ;;  %s873_s14 = sshll.u32 %s1186_s18, 10  ;;  %s1342_s12 = int_to_ptr.vmem [resolvable:$true] %s212_s12 }
  0x43   : > { %s1348_s5 = scalar_lea.hbm %s1544_s1, %s873_s14  ;;  %s202_s11 = scalar_lea.sflag [#allocation6], %s201_s13 }
  0x44   : > { %s1056_s8 = scalar_lea.hbm %s1348_s5, 1024  ;;  %s1061_s29 = scalar_lea.hbm %s1544_s1, 2048 }
  0x45   : > { %p1057_p1 = scmp.ne.s32.totalorder %s1348_s5, %s1056_s8  ;;  %p1062_p8 = scmp.lt.s32.totalorder %s1348_s5, %s1544_s1 }
  0x46   : > { %p1063_p3 = scmp.lt.s32.totalorder %s1061_s29, %s1056_s8 }
  0x47   : > { %p1059_p4 = pnand %p1057_p1, %p1030_p7 }
  0x48   : > { %p1064_p9 = por %p1063_p3, %p1062_p8 }
  0x49   : > { %p1060_p6 = pneg %p1059_p4 }
  0x4b   : > { %p1065_p10 = pnand %p1064_p9, %p1060_p6 }
  0x4d   : > { %1068 = shalt.err (!%p1065_p10)
}
  0x4e   : > { %s1069_s13 = scalar_lea.vmem %s1342_s12, 1024  ;;  %s1192_s14 = smov [#allocation5]  }
  0x4f   : > { %p1070_p12 = scmp.ne.s32.totalorder %s1342_s12, %s1069_s13  ;;  %s1074_s20 = sshll.u32 %s1192_s14, 4  ;;  %s1075_s20 = int_to_ptr.vmem [resolvable:$false] %s1074_s20 }
  0x50   : > { %s1076_s25 = scalar_lea.vmem %s1075_s20, 2048  ;;  %p1077_p5 = scmp.lt.s32.totalorder %s1342_s12, %s1075_s20 }
  0x51   : > { %p1072_p13 = pnand %p1070_p12, %p1030_p7  ;;  %p1078_p2 = scmp.lt.s32.totalorder %s1076_s25, %s1069_s13 }
  0x53   : > { %p1073_p0 = pneg %p1072_p13  ;;  %p1079_p1 = por %p1078_p2, %p1077_p5 }
  0x55   : > { %p1080_p4 = pnand %p1079_p1, %p1073_p0 }
  0x57   : > { %1083 = shalt.err (!%p1080_p4)
}
  0x58   : > { %s1560_s8 = smov 128   ;;  %p1561_p7 = scmp.ne.s32.totalorder %s1555_s23, 0 }
  0x59   : > { %948 = dma.hbm_to_vmem [thread:$0]  (!%p1315_p11), %s1348_s5, 1024, %s1342_s12, %s202_s11, %s1560_s8, %s1560_s8, %s1190_s6  }
  0x5a   : > { %224 = sbr.rel (%p1561_p7) target bundleno = 963 (0x3c3), region = 32  ;;  %s1378_s24 = sand.u32 (!%p1561_p7), 1, %s1178_s16  }
  0x5b   : > { %s1381_s26 = sshll.u32 (!%p1561_p7), %s1378_s24, 3  ;;  %s227_s29 = scalar_lea.sflag (!%p1561_p7), [#allocation3], %s1378_s24 }
  0x5c   : > { %s230_s28 = scalar_lea.vmem (!%p1561_p7), [#allocation2], %s1381_s26  ;;  %p1562_p6 = scmp.ne.s32.totalorder (!%p1561_p7), %s1553_s21, 0 }
  0x5f   : > { %1153 = dma.done.wait (%p1562_p6), %s227_s29, 128  }
  0x60   : > { %1155 = vsyncadd (%p1562_p6), %s227_s29, 4294967168  ;;  %s235_s23 = sand.u32 1, %s1244_s19   ;;  %s863_s6 = sshll.u32 %s1378_s24, 6 }
  0x61   : > { %s236_s12 = scalar_lea.sflag [#allocation6], %s235_s23  ;;  %s1391_s5 = scalar_lea.vmem [#allocation5], %s863_s6 }
  0x62   : > { %1157 = dma.done.wait (%p1562_p6), %s236_s12, 1024  }
  0x63   : > { %1159 = vsyncadd (%p1562_p6), %s236_s12, 4294966272  ;;  %p1563_p11 = scmp.eq.s32.totalorder %s1244_s19, 0 }
  0x65   : > { %1161 = dma.done.wait (%p1563_p11), [#allocation6], 2048   ;;  %p1564_p8 = pmov %p1563_p11 }
  0x66   : > { %v1193_v0 = vmov 0.0   ;;  %vm1194_vm0 = vmmov 0   ;;  %v295_v1 = vld [vmem:[#allocation7 + $0x78] sm:$0xff]  ;;  %v294_v2 = vld [vmem:[#allocation7 + $0x70] sm:$0xff]  ;;  %v293_v3 = vld [vmem:[#allocation7 + $0x68] sm:$0xff]  ;;  %v379_v20 = vlaneseq  ;;  %vm530_vm1 = vcmask 1041409  }
  0x67   : > { %1163 = vsyncadd (%p1564_p8), [#allocation6], 4294965248  ;;  %891 = vmatprep.subr.mxu0 %v1193_v0  ;;  %923 = vmatprep.mubr.msk.f32.mxu0 %vm1194_vm0, %v1193_v0  ;;  %v292_v4 = vld [vmem:[#allocation7 + $0x60] sm:$0xff]  ;;  %v291_v5 = vld [vmem:[#allocation7 + $0x58] sm:$0xff]  ;;  %v1195_v18 = vmov 1966171168  }
  0x68   : > { %892 = vmatpush3.msra.mxu0 %v295_v1  ;;  %v290_v6 = vld [vmem:[#allocation7 + $0x50] sm:$0xff]  ;;  %v289_v7 = vld [vmem:[#allocation7 + $0x48] sm:$0xff]  ;;  %v288_v8 = vld [vmem:[#allocation7 + $0x40] sm:$0xff]  ;;  %v377_v19 = vunpack.c.l.s4 %v1195_v18  ;;  %v1403_v22 = vshrl.u32 %v379_v20, 7  ;;  %vm532_vm2 = vcmask 1042434   ;;  %vm534_vm3 = vcmask 1043459  }
  0x69   : > { %893 = vmatprep.subr.mxu0 %v1193_v0  ;;  %v287_v9 = vld [vmem:[#allocation7 + $0x38] sm:$0xff]  ;;  %v286_v10 = vld [vmem:[#allocation7 + $0x30] sm:$0xff]  ;;  %v285_v11 = vld [vmem:[#allocation7 + $0x28] sm:$0xff]  ;;  %vm536_vm4 = vcmask 1044484   ;;  %vm538_vm5 = vcmask 1045509   ;;  %vm540_vm6 = vcmask 1046534  }
  0x6a   : > { %894 = vmatpush3.msra.mxu0 %v294_v2  ;;  %v284_v12 = vld [vmem:[#allocation7 + $0x20] sm:$0xff]  ;;  %v283_v13 = vld [vmem:[#allocation7 + $0x18] sm:$0xff]  ;;  %v282_v14 = vld [vmem:[#allocation7 + $0x10] sm:$0xff]  ;;  %v378_v21 = vunpack.c.0.s8 %v377_v19  ;;  %v1407_v27 = vsub.s32 0, %v1403_v22  ;;  %vm542_vm7 = vcmask 1047559   ;;  %vm545_vm8 = vcmask 64512  }
  0x6b   : > { %895 = vmatprep.subr.mxu0 %v1193_v0  ;;  %v281_v15 = vld [vmem:[#allocation7 + $0x8] sm:$0xff]  ;;  %v280_v16 = vld [vmem:[#allocation7] sm:$0xff]  ;;  %v279_v17 = vld [vmem:[%s230_s28] sm:$0xff]  ;;  %s277_s21 = scalar_lea.vmem [#allocation9], %s1381_s26  ;;  %s869_s11 = sshll.u32 %s1244_s19, 7 }
  0x6c   : > { %896 = vmatpush3.msra.mxu0 %v293_v3  ;;  %v381_v23 = vsub.s32 %v378_v21, %v1403_v22  ;;  %v1410_v32 = vld [vmem:[%s1391_s5] sm:$0xff]  ;;  %v1414_v37 = vld [vmem:[%s1391_s5 + $0x10] sm:$0xff]  ;;  %v1420_v43 = vld [vmem:[%s1391_s5 + $0x8] sm:$0xff]  ;;  %s716_s13 = scalar_lea.hbm %s1547_s4, %s869_s11  ;;  %s718_s14 = sshll.u32 %s277_s21, 4  ;;  %s719_s14 = int_to_ptr.vmem [resolvable:$true] %s718_s14 }
  0x6d   : > { %897 = vmatprep.subr.mxu0 %v1193_v0  ;;  %v1425_v47 = vld [vmem:[%s1391_s5 + $0x18] sm:$0xff]  ;;  %v1430_v51 = vld [vmem:[%s1391_s5 + $0x20] sm:$0xff]  ;;  %v1435_v55 = vld [vmem:[%s1391_s5 + $0x28] sm:$0xff]  ;;  %s692_s20 = scalar_lea.sflag [#allocation10], %s1378_s24  ;;  %s1084_s25 = scalar_lea.vmem %s719_s14, 128 }
  0x6e   : > { %898 = vmatpush3.msra.mxu0 %v292_v4  ;;  %v1440_v58 = vld [vmem:[%s1391_s5 + $0x30] sm:$0xff]  ;;  %v1445_v61 = vld [vmem:[%s1391_s5 + $0x38] sm:$0xff]  ;;  %p1085_p3 = scmp.ne.s32.totalorder %s719_s14, %s1084_s25  ;;  %p1565_p9 = scmp.ne.s32.totalorder %s1558_s10, 0 }
  0x6f   : > { %899 = vmatprep.subr.mxu0 %v1193_v0  ;;  %s1196_s8 = smov [#allocation9]  }
  0x70   : > { %900 = vmatpush3.msra.mxu0 %v291_v5  ;;  %p1086_p10 = pnand %p1085_p3, %p1565_p9  ;;  %s1088_s29 = sshll.u32 %s1196_s8, 4  ;;  %s1089_s29 = int_to_ptr.vmem [resolvable:$false] %s1088_s29 }
  0x71   : > { %901 = vmatprep.subr.mxu0 %v1193_v0  ;;  %s1090_s28 = scalar_lea.vmem %s1089_s29, 256  ;;  %p1091_p13 = scmp.lt.s32.totalorder %s719_s14, %s1089_s29 }
  0x72   : > { %902 = vmatpush3.msra.mxu0 %v290_v6  ;;  %p1087_p12 = pneg %p1086_p10  ;;  %p1092_p0 = scmp.lt.s32.totalorder %s1090_s28, %s1084_s25 }
  0x73   : > { %903 = vmatprep.subr.mxu0 %v1193_v0 }
  0x74   : > { %904 = vmatpush3.msra.mxu0 %v289_v7  ;;  %p1093_p5 = por %p1092_p0, %p1091_p13 }
  0x75   : > { %905 = vmatprep.subr.mxu0 %v1193_v0 }
  0x76   : > { %906 = vmatpush3.msra.mxu0 %v288_v8  ;;  %p1094_p2 = pnand %p1093_p5, %p1087_p12 }
  0x77   : > { %907 = vmatprep.subr.mxu0 %v1193_v0 }
  0x78   : > { %908 = vmatpush3.msra.mxu0 %v287_v9 }
  0x79   : > { %909 = vmatprep.subr.mxu0 %v1193_v0 }
  0x7a   : > { %910 = vmatpush3.msra.mxu0 %v286_v10 }
  0x7b   : > { %911 = vmatprep.subr.mxu0 %v1193_v0 }
  0x7c   : > { %912 = vmatpush3.msra.mxu0 %v285_v11 }
  0x7d   : > { %913 = vmatprep.subr.mxu0 %v1193_v0 }
  0x7e   : > { %914 = vmatpush3.msra.mxu0 %v284_v12 }
  0x7f   : > { %915 = vmatprep.subr.mxu0 %v1193_v0 }
  0x80   : > { %916 = vmatpush3.msra.mxu0 %v283_v13 }
  0x81   : > { %917 = vmatprep.subr.mxu0 %v1193_v0 }
  0x82   : > { %918 = vmatpush3.msra.mxu0 %v282_v14 }
  0x83   : > { %919 = vmatprep.subr.mxu0 %v1193_v0 }
  0x84   : > { %920 = vmatpush3.msra.mxu0 %v281_v15 }
  0x85   : > { %921 = vmatprep.subr.mxu0 %v1193_v0  ;;  %v497_v0 = vand.u32 127, %v379_v20 }
  0x86   : > { %922 = vmatpush3.msra.mxu0 %v280_v16 }
  0x87   : > { %924 = vmatmul.mubr.f32.vlgmr.msra.gmra.mxu0 %v279_v17  ;;  %v500_v2 = vsub.s32 %v497_v0, %v1403_v22 }
 0x147   : > { %v362_v24 = vpop.f32.mrf.mxu0 }
 0x148   : > { %v375_v25 = vcombine.high %v362_v24, %v362_v24  ;;  %v382_v26 = vrot.slane %v362_v24, %v381_v23 }
 0x149   : > { %v925_v28 = vpop.f32.mrf.mxu0 }
 0x14a   : > { %v389_v29 = vrot.slane %v375_v25, %v381_v23  ;;  %v390_v30 = vcombine.high %v382_v26, %v382_v26  ;;  %v398_v31 = vrot.slane %v382_v26, %v381_v23 }
 0x14c   : > { %v391_v33 = vcombine.high %v389_v29, %v389_v29  ;;  %v427_v34 = vrot.slane %v398_v31, %v1407_v27  ;;  %v420_v35 = vcombine.high %v398_v31, %v398_v31  ;;  %v412_v36 = vrot.slane %v390_v30, %v381_v23 }
 0x14d   : > { %v405_v38 = vrot.slane %v389_v29, %v381_v23 }
 0x14e   : > { %v464_v39 = vmul.f32 %v427_v34, %v1410_v32  ;;  %v435_v40 = vrot.slane %v420_v35, %v1407_v27  ;;  %v431_v41 = vrot.slane %v412_v36, %v1407_v27  ;;  %v422_v42 = vcombine.high %v412_v36, %v412_v36 }
 0x14f   : > { %v419_v46 = vrot.slane %v391_v33, %v381_v23  ;;  %v443_v49 = vrot.slane %v405_v38, %v1407_v27  ;;  %v421_v50 = vcombine.high %v405_v38, %v405_v38  ;;  %v566_v34 = vsub.s32 1, %v1403_v22 }
 0x150   : > { %472 = vadd.xlane.f32.xlu0 %v464_v39  ;;  %v466_v44 = vmul.f32 %v435_v40, %v1414_v37  ;;  %v439_v45 = vrot.slane %v422_v42, %v1407_v27  ;;  %v465_v48 = vmul.f32 %v431_v41, %v1420_v43  ;;  %v573_v40 = vsub.s32 2, %v1403_v22 }
 0x151   : > { %v447_v53 = vrot.slane %v419_v46, %v1407_v27  ;;  %v423_v54 = vcombine.high %v419_v46, %v419_v46  ;;  %v468_v56 = vmul.f32 %v443_v49, %v1430_v51  ;;  %v451_v57 = vrot.slane %v421_v50, %v1407_v27 }
 0x152   : > { %476 = vadd.xlane.f32.xlu1 %v466_v44  ;;  %v467_v52 = vmul.f32 %v439_v45, %v1425_v47  ;;  %v587_v41 = vsub.s32 4, %v1403_v22  ;;  %v580_v45 = vsub.s32 3, %v1403_v22  ;;  %v601_v46 = vsub.s32 6, %v1403_v22 }
 0x153   : > { %v469_v59 = vmul.f32 %v447_v53, %v1435_v55  ;;  %v455_v60 = vrot.slane %v423_v54, %v1407_v27  ;;  %v470_v62 = vmul.f32 %v451_v57, %v1440_v58  ;;  %v594_v49 = vsub.s32 5, %v1403_v22 }
 0x154   : > { %474 = vadd.xlane.f32.xlu0 %v465_v48 }
 0x155   : > { %v471_v63 = vmul.f32 %v455_v60, %v1445_v61 }
 0x156   : > { %478 = vadd.xlane.f32.xlu1 %v467_v52  ;;  %v608_v52 = vsub.s32 7, %v1403_v22 }
 0x158   : > { %480 = vadd.xlane.f32.xlu0 %v468_v56 }
 0x15a   : > { %482 = vadd.xlane.f32.xlu1 %v469_v59 }
 0x15c   : > { %484 = vadd.xlane.f32.xlu0 %v470_v62 }
 0x15e   : > { %486 = vadd.xlane.f32.xlu1 %v471_v63 }
 0x1d9   : > { %v473_v1 = vpop.xlane.xlu0 %472 }
 0x1da   : > { %v501_v5 = vrot.slane %v473_v1, %v500_v2 }
 0x1db   : > { %v477_v3 = vpop.xlane.xlu1 %476 }
 0x1dc   : > { %v509_v7 = vrot.slane %v477_v3, %v500_v2 }
 0x1dd   : > { %v475_v4 = vpop.xlane.xlu0 %474 }
 0x1de   : > { %v505_v6 = vrot.slane %v475_v4, %v500_v2 }
 0x1df   : > { %v479_v8 = vpop.xlane.xlu1 %478 }
 0x1e0   : > { %v531_v9 = vsel %vm530_vm1, %v505_v6, %v501_v5  ;;  %v513_v10 = vrot.slane %v479_v8, %v500_v2 }
 0x1e1   : > { %v533_v11 = vsel %vm532_vm2, %v509_v7, %v531_v9  ;;  %v481_v12 = vpop.xlane.xlu0 %480 }
 0x1e2   : > { %v535_v13 = vsel %vm534_vm3, %v513_v10, %v533_v11  ;;  %v517_v14 = vrot.slane %v481_v12, %v500_v2 }
 0x1e3   : > { %v483_v15 = vpop.xlane.xlu1 %482 }
 0x1e4   : > { %v537_v16 = vsel %vm536_vm4, %v517_v14, %v535_v13  ;;  %v521_v17 = vrot.slane %v483_v15, %v500_v2 }
 0x1e5   : > { %v485_v18 = vpop.xlane.xlu0 %484 }
 0x1e6   : > { %v539_v19 = vsel %vm538_vm5, %v521_v17, %v537_v16  ;;  %v525_v20 = vrot.slane %v485_v18, %v500_v2 }
 0x1e7   : > { %v487_v21 = vpop.xlane.xlu1 %486 }
 0x1e8   : > { %v529_v23 = vrot.slane %v487_v21, %v500_v2  ;;  %v541_v24 = vsel %vm540_vm6, %v525_v20, %v539_v19 }
 0x1ea   : > { %v543_v25 = vsel %vm542_vm7, %v529_v23, %v541_v24 }
 0x1eb   : > { %v546_v26 = vsel %vm545_vm8, %v543_v25, -1e+30 }
 0x1ec   : > { %547 = vmax.xlane.f32.xlu0 %v546_v26 }
 0x275   : > { %v548_v28 = vpop.xlane.xlu0 %547 }
 0x276   : > { %v549_v29 = vsub.f32 %v546_v26, %v548_v28 }
 0x278   : > { %v550_v30 = vmul.f32 1.442695, %v549_v29 }
 0x27a   : > { %998 = vpow2.f32 %v550_v30 }
 0x287   : > { %v999_v31 = vpop.eup %998 }
 0x288   : > { %552 = vadd.xlane.f32.xlu1 %v999_v31 }
 0x311   : > { %v553_v33 = vpop.xlane.xlu1 %552 }
 0x312   : > { %1000 = vrcp.f32 %v553_v33 }
 0x31f   : > { %v1001_v35 = vpop.eup %1000 }
 0x320   : > { %v555_v36 = vmul.f32 %v1001_v35, %v999_v31 }
 0x322   : > { %v567_v38 = vrot.slane %v555_v36, %v566_v34  ;;  %v560_v39 = vrot.slane %v555_v36, %v1407_v27  ;;  %556 = vst [vmem:[%s277_s21] sm:$0xff] %v555_v36  ;;  %v574_v42 = vrot.slane %v555_v36, %v573_v40  ;;  %v588_v44 = vrot.slane %v555_v36, %v587_v41 }
 0x323   : > { %v581_v27 = vrot.slane %v555_v36, %v580_v45  ;;  %v602_v48 = vrot.slane %v555_v36, %v601_v46  ;;  %v595_v50 = vrot.slane %v555_v36, %v594_v49  ;;  %v609_v53 = vrot.slane %v555_v36, %v608_v52 }
 0x324   : > { %569 = vbcast.lane.b32.xlu1 %v567_v38, 256  ;;  %562 = vbcast.lane.b32.xlu0 %v560_v39, 256 }
 0x328   : > { %576 = vbcast.lane.b32.xlu1 %v574_v42, 256  ;;  %590 = vbcast.lane.b32.xlu0 %v588_v44, 256 }
 0x32c   : > { %583 = vbcast.lane.b32.xlu1 %v581_v27, 256  ;;  %604 = vbcast.lane.b32.xlu0 %v602_v48, 256 }
 0x330   : > { %597 = vbcast.lane.b32.xlu1 %v595_v50, 256 }
 0x334   : > { %611 = vbcast.lane.b32.xlu1 %v609_v53, 256 }
 0x335   : > { %1097 = shalt.err (!%p1094_p2)
}
 0x336   : > { %s1098_s23 = scalar_lea.hbm %s716_s13, 128  ;;  %s1102_s5 = scalar_lea.hbm %s1547_s4, 256 }
 0x337   : > { %p1099_p1 = scmp.ne.s32.totalorder %s716_s13, %s1098_s23  ;;  %p1103_p6 = scmp.lt.s32.totalorder %s716_s13, %s1547_s4 }
 0x338   : > { %p1104_p11 = scmp.lt.s32.totalorder %s1102_s5, %s1098_s23 }
 0x339   : > { %p1100_p4 = pnand %p1099_p1, %p1565_p9 }
 0x33a   : > { %p1105_p8 = por %p1104_p11, %p1103_p6 }
 0x33b   : > { %p1101_p7 = pneg %p1100_p4 }
 0x33d   : > { %p1106_p3 = pnand %p1105_p8, %p1101_p7 }
 0x33f   : > { %1109 = shalt.err (!%p1106_p3)
}
 0x340   : > { %935 = dma.vmem_to_hbm [thread:$0]  (%p1565_p9), %s719_s14, 128, %s716_s13, %s692_s20  }
 0x341   : > { %s270_s7 = scalar_lea.vmem [#allocation8], %s1381_s26  ;;  %s1505_s25 = scalar_lea.hbm %s1546_s3, %s869_s11 }
 0x342   : > { %s705_s13 = sshll.u32 %s270_s7, 4  ;;  %s687_s8 = scalar_lea.sflag [#allocation4], %s1378_s24  ;;  %s706_s13 = int_to_ptr.vmem [resolvable:$true] %s705_s13 }
 0x343   : > { %s1110_s29 = scalar_lea.vmem %s706_s13, 128  ;;  %s1197_s26 = smov [#allocation8]  }
 0x344   : > { %p1111_p10 = scmp.ne.s32.totalorder %s706_s13, %s1110_s29  ;;  %s1114_s28 = sshll.u32 %s1197_s26, 4  ;;  %s1115_s28 = int_to_ptr.vmem [resolvable:$false] %s1114_s28 }
 0x345   : > { %s1116_s23 = scalar_lea.vmem %s1115_s28, 256  ;;  %p1117_p0 = scmp.lt.s32.totalorder %s706_s13, %s1115_s28 }
 0x346   : > { %p1112_p12 = pnand %p1111_p10, %p1565_p9  ;;  %p1118_p5 = scmp.lt.s32.totalorder %s1116_s23, %s1110_s29 }
 0x348   : > { %p1113_p13 = pneg %p1112_p12  ;;  %p1119_p2 = por %p1118_p5, %p1117_p0 }
 0x34a   : > { %p1120_p1 = pnand %p1119_p2, %p1113_p13 }
 0x396   : > { %v570_v22 = vpop.permute.xlu1 %569  ;;  %v563_v54 = vpop.permute.xlu0 %562 }
 0x397   : > { %v614_v56 = vmul.f32 %v570_v22, %v1420_v43  ;;  %v613_v57 = vmul.f32 %v563_v54, %v1410_v32 }
 0x399   : > { %v627_v59 = vrot.slane %v614_v56, 4  ;;  %v621_v60 = vrot.slane %v613_v57, 4 }
 0x39a   : > { %v577_v62 = vpop.permute.xlu1 %576  ;;  %v591_v63 = vpop.permute.xlu0 %590 }
 0x39b   : > { %v628_v0 = vadd.f32 %v627_v59, %v614_v56  ;;  %v622_v1 = vadd.f32 %v621_v60, %v613_v57  ;;  %v615_v2 = vmul.f32 %v577_v62, %v1414_v37  ;;  %v617_v3 = vmul.f32 %v591_v63, %v1430_v51 }
 0x39d   : > { %v629_v4 = vrot.slane %v628_v0, 2  ;;  %v623_v5 = vrot.slane %v622_v1, 2  ;;  %v633_v6 = vrot.slane %v615_v2, 4  ;;  %v645_v7 = vrot.slane %v617_v3, 4 }
 0x39e   : > { %v584_v8 = vpop.permute.xlu1 %583  ;;  %v605_v9 = vpop.permute.xlu0 %604 }
 0x39f   : > { %v630_v10 = vadd.f32 %v629_v4, %v628_v0  ;;  %v634_v43 = vadd.f32 %v633_v6, %v615_v2  ;;  %v646_v11 = vadd.f32 %v645_v7, %v617_v3  ;;  %v624_v32 = vadd.f32 %v623_v5, %v622_v1 }
 0x3a0   : > { %v616_v12 = vmul.f32 %v584_v8, %v1425_v47  ;;  %v619_v13 = vmul.f32 %v605_v9, %v1440_v58 }
 0x3a1   : > { %v635_v14 = vrot.slane %v634_v43, 2  ;;  %v631_v17 = vrot.slane %v630_v10, 1  ;;  %v647_v18 = vrot.slane %v646_v11, 2  ;;  %v625_v19 = vrot.slane %v624_v32, 1 }
 0x3a2   : > { %v639_v15 = vrot.slane %v616_v12, 4  ;;  %v657_v16 = vrot.slane %v619_v13, 4  ;;  %v598_v37 = vpop.permute.xlu1 %597 }
 0x3a3   : > { %v636_v51 = vadd.f32 %v635_v14, %v634_v43  ;;  %v618_v23 = vmul.f32 %v598_v37, %v1435_v55  ;;  %v648_v47 = vadd.f32 %v647_v18, %v646_v11  ;;  %v632_v30 = vadd.f32 %v631_v17, %v630_v10 }
 0x3a4   : > { %v640_v20 = vadd.f32 %v639_v15, %v616_v12  ;;  %v658_v21 = vadd.f32 %v657_v16, %v619_v13  ;;  %v626_v31 = vadd.f32 %v625_v19, %v624_v32 }
 0x3a5   : > { %v637_v24 = vrot.slane %v636_v51, 1  ;;  %v651_v28 = vrot.slane %v618_v23, 4  ;;  %v649_v41 = vrot.slane %v648_v47, 1 }
 0x3a6   : > { %v641_v25 = vrot.slane %v640_v20, 2  ;;  %v659_v26 = vrot.slane %v658_v21, 2  ;;  %v612_v29 = vpop.permute.xlu1 %611  ;;  %v677_v42 = vsel %vm530_vm1, %v632_v30, %v626_v31 }
 0x3a7   : > { %v620_v58 = vmul.f32 %v612_v29, %v1445_v61  ;;  %v652_v34 = vadd.f32 %v651_v28, %v618_v23  ;;  %v638_v35 = vadd.f32 %v637_v24, %v636_v51  ;;  %v650_v50 = vadd.f32 %v649_v41, %v648_v47 }
 0x3a8   : > { %v642_v33 = vadd.f32 %v641_v25, %v640_v20  ;;  %v660_v39 = vadd.f32 %v659_v26, %v658_v21 }
 0x3a9   : > { %v663_v36 = vrot.slane %v620_v58, 4  ;;  %v653_v40 = vrot.slane %v652_v34, 2  ;;  %v678_v46 = vsel %vm532_vm2, %v638_v35, %v677_v42 }
 0x3aa   : > { %v643_v38 = vrot.slane %v642_v33, 1  ;;  %v661_v48 = vrot.slane %v660_v39, 1 }
 0x3ab   : > { %v664_v55 = vadd.f32 %v663_v36, %v620_v58  ;;  %v654_v45 = vadd.f32 %v653_v40, %v652_v34 }
 0x3ac   : > { %v644_v44 = vadd.f32 %v643_v38, %v642_v33  ;;  %v662_v56 = vadd.f32 %v661_v48, %v660_v39 }
 0x3ad   : > { %v665_v61 = vrot.slane %v664_v55, 2  ;;  %v655_v49 = vrot.slane %v654_v45, 1 }
 0x3ae   : > { %v679_v27 = vsel %vm534_vm3, %v644_v44, %v678_v46 }
 0x3af   : > { %v666_v52 = vadd.f32 %v665_v61, %v664_v55  ;;  %v656_v53 = vadd.f32 %v655_v49, %v654_v45  ;;  %v680_v22 = vsel %vm536_vm4, %v650_v50, %v679_v27 }
 0x3b1   : > { %v667_v54 = vrot.slane %v666_v52, 1  ;;  %v681_v57 = vsel %vm538_vm5, %v656_v53, %v680_v22 }
 0x3b2   : > { %v682_v60 = vsel %vm540_vm6, %v662_v56, %v681_v57 }
 0x3b3   : > { %v668_v59 = vadd.f32 %v667_v54, %v666_v52 }
 0x3b5   : > { %v683_v62 = vsel %vm542_vm7, %v668_v59, %v682_v60 }
 0x3b6   : > { %685 = vst [vmem:[%s270_s7] sm:$0xff] %v683_v62 }
 0x3b7   : > { %1123 = shalt.err (!%p1120_p1)
}
 0x3b8   : > { %s1124_s19 = scalar_lea.hbm %s1505_s25, 128  ;;  %s1128_s6 = scalar_lea.hbm %s1546_s3, 256 }
 0x3b9   : > { %p1125_p4 = scmp.ne.s32.totalorder %s1505_s25, %s1124_s19  ;;  %p1129_p11 = scmp.lt.s32.totalorder %s1505_s25, %s1546_s3 }
 0x3ba   : > { %p1130_p8 = scmp.lt.s32.totalorder %s1128_s6, %s1124_s19 }
 0x3bb   : > { %p1126_p7 = pnand %p1125_p4, %p1565_p9 }
 0x3bc   : > { %p1131_p3 = por %p1130_p8, %p1129_p11 }
 0x3bd   : > { %p1127_p6 = pneg %p1126_p7 }
 0x3bf   : > { %p1132_p10 = pnand %p1131_p3, %p1127_p6 }
 0x3c1   : > { %1135 = shalt.err (!%p1132_p10)
}
 0x3c2   : > { %934 = dma.vmem_to_hbm [thread:$0]  (%p1565_p9), %s706_s13, 128, %s1505_s25, %s687_s8  }
 0x3c3 PF: > { %s730_s21 = sand.u32 1, %s1174_s15   ;;  %p1566_p12 = scmp.ne.s32.totalorder %s1554_s22, 0 }
 0x3c4   : > { %p1567_p13 = scmp.ge.s32.totalorder %s1186_s18, 2  ;;  %s731_s30 = scalar_lea.sflag [#allocation4], %s730_s21 }
 0x3c6   : > { %p950_p0 = pnand %p1567_p13, %p1566_p12 }
 0x3c8   : > { %p951_p5 = pneg %p950_p0 }
 0x3ca   : > { %1165 = dma.done.wait (%p951_p5), %s731_s30, 128  }
 0x3cb   : > { %1167 = vsyncadd (%p951_p5), %s731_s30, 4294967168  ;;  %s740_s7 = scalar_lea.sflag [#allocation10], %s730_s21 }
 0x3cc   : > { %1169 = dma.done.wait (%p951_p5), %s740_s7, 128  }
 0x3cd   : > { %1171 = vsyncadd (%p951_p5), %s740_s7, 4294967168  ;;  %p24_p9 = scmp.ge.s32.totalorder %s1277_s27, 4   ;;  %s1568_s15 = smov %s1178_s16 }
 0x3ce   : > { %s1569_s16 = smov %s1182_s17  ;;  %s1570_s17 = smov %s1297_s9 }
 0x3cf   : > { %s1571_s18 = smov %s1277_s27  ;;  %26 = sbr.rel (!%p24_p9) target bundleno = 9 (0x9), region = 111 }
 0x3d4   :  { %745 = vsyncpa [#allocation3], 1 }
 0x3d5   :  { %747 = vsyncpa [#allocation3 + $0x1], 1 }
 0x3d6   :  { %748 = vsyncpa [#allocation6], 1 }
 0x3d7   :  { %750 = vsyncpa [#allocation6 + $0x1], 1 }
 0x3d8   :  { %751 = vsyncpa [#allocation4], 1 }
 0x3d9   :  { %753 = vsyncpa [#allocation4 + $0x1], 1 }
 0x3da   :  { %754 = vsyncpa [#allocation10], 1 }
 0x3db   :  { %756 = vsyncpa [#allocation10 + $0x1], 1 }

</bundles_post_ra>
